<compile_context>
chip_gen: v6e
topology: v6e:2x2x1
jax: 0.10.0
libtpu: 0.0.40
codegen_flags: <defaults>
</compile_context>

<pallas_src>
import functools
import math

import jax
import jax.numpy as jnp
from jax.experimental import pallas as pl
from jax.experimental.pallas import tpu as pltpu

# ----------------------------- problem sizes -------------------------------
B, CIN, H, W = 2, 4, 16, 16
COUT, KH, KW = 8, 3, 3
NCLASS = 10
BN_EPS = 1e-5
EMA_DECAY = 0.9

NTAP = KH * KW
KIM = NTAP * CIN                  # im2col K (36)
KPAD = 128                        # K padded to one full lane tile
CPAD = 128                        # conv channels padded to one full lane tile
NPAD = 128                        # classes padded to one full lane tile

EMA_ROW_BLOCK = 512               # (rows,128) f32 rows per EMA grid step (~256 KiB)


# ------------------------- fused forward kernel ----------------------------

def _forward_kernel(patch_ref, wim_ref, scale_ref, shift_ref, fcw_ref, fcb_ref,
                    out_ref):
    # patch : (B*H*W, KPAD)    im2col patches, K zero-padded to 128
    # wim   : (KPAD, CPAD)     conv weights as im2col matrix (zero-padded)
    # scale/shift : (1, CPAD)  folded inference BatchNorm
    # fcw   : (CPAD, NPAD)     fc weight with pool-average + paddings folded in
    # fcb   : (1, NPAD)
    # out   : (B, NPAD)        lane-dense padded logits
    # ONE full-tile MXU matmul does the whole 3x3 conv.
    y = jnp.dot(patch_ref[...], wim_ref[...], preferred_element_type=jnp.float32)
    # Fused BN + ReLU (wide VPU work, lane-dense).
    y = jnp.maximum(y * scale_ref[...] + shift_ref[...], 0.0)
    # Global average pool: sublane reduce on the XLU (1/HW is folded into fcw).
    pooled = jnp.sum(y.reshape(B, H * W, CPAD), axis=1)
    out_ref[...] = (jnp.dot(pooled, fcw_ref[...],
                            preferred_element_type=jnp.float32) + fcb_ref[...])


def fused_forward(patches, wim, scale, shift, fcw, fcb):
    return pl.pallas_call(
        _forward_kernel,
        out_shape=jax.ShapeDtypeStruct((B, NPAD), jnp.float32),
    )(patches, wim, scale, shift, fcw, fcb)


@jax.jit
def _forward_jit(x_nchw, wim, scale, shift, fcw, fcb):
    # Boundary layout plumbing only (NCHW -> NHWC, 1px halo, im2col patch
    # extraction, K padding) on the tiny input; all compute (conv matmul, BN,
    # ReLU, pool, FC) stays inside the single fused Pallas call.
    x = jnp.transpose(x_nchw, (0, 2, 3, 1))
    xpad = jnp.pad(x, ((0, 0), (1, 1), (1, 1), (0, 0)))
    taps = [xpad[:, kh:kh + H, kw:kw + W, :]
            for kh in range(KH) for kw in range(KW)]
    patches = jnp.concatenate(taps, axis=-1).reshape(B * H * W, KIM)
    patches = jnp.pad(patches, ((0, 0), (0, KPAD - KIM)))
    logits_pad = fused_forward(patches, wim, scale, shift, fcw, fcb)
    return logits_pad[:, :NCLASS]


# ------------------------------ EMA kernel ---------------------------------

def _ema_kernel(mu_ref, shadow_ref, new_ref, out_ref):
    # shadow_new = mu * shadow + (1 - mu) * new   (elementwise, memory-bound)
    mu = mu_ref[0]
    out_ref[...] = mu * shadow_ref[...] + (1.0 - mu) * new_ref[...]


def ema_update_packed(mu_arr, shadow_packed, new_packed):
    rows, lanes = shadow_packed.shape
    row_block = rows if rows <= EMA_ROW_BLOCK else EMA_ROW_BLOCK
    return pl.pallas_call(
        _ema_kernel,
        out_shape=jax.ShapeDtypeStruct((rows, lanes), jnp.float32),
        grid=(rows // row_block,),
        in_specs=[
            pl.BlockSpec(memory_space=pltpu.MemorySpace.SMEM),    # mu scalar
            pl.BlockSpec((row_block, lanes), lambda i: (i, 0)),   # shadow slab
            pl.BlockSpec((row_block, lanes), lambda i: (i, 0)),   # live params slab
        ],
        out_specs=pl.BlockSpec((row_block, lanes), lambda i: (i, 0)),
        input_output_aliases={1: 0},          # update the shadow slab in place
        compiler_params=pltpu.CompilerParams(
            dimension_semantics=("parallel",),
            vmem_limit_bytes=32 * 1024 * 1024,
        ),
    )(mu_arr, shadow_packed, new_packed)


# ------------------------- packing helpers (glue) ---------------------------

def _pack(tree):
    """Flatten a dict of float arrays into a lane-aligned (rows, 128) f32 slab."""
    leaves = [jnp.ravel(v).astype(jnp.float32) for _, v in sorted(tree.items())]
    flat = jnp.concatenate(leaves)
    n = flat.shape[0]
    unit = EMA_ROW_BLOCK * 128 if n > EMA_ROW_BLOCK * 128 else 8 * 128
    pad = (-n) % unit
    if pad:
        flat = jnp.pad(flat, (0, pad))
    return flat.reshape(-1, 128)


def _unpack(packed, shapes):
    flat = packed.reshape(-1)
    out, off = {}, 0
    for k, shape in sorted(shapes.items()):
        sz = math.prod(shape)
        out[k] = flat[off:off + sz].reshape(shape)
        off += sz
    return out


@functools.partial(jax.jit, donate_argnums=(1,))
def _ema_update_jit(mu_arr, shadow_packed, new_tree):
    # packing of the live tree fuses into this jit; the shadow slab is donated
    # and aliased straight through the Pallas call (no extra HBM copy).
    return ema_update_packed(mu_arr, shadow_packed, _pack(new_tree))


# -------------------------------- the model --------------------------------

class SmallConvNet:
    """Conv3x3(no bias) -> BatchNorm(running stats) -> ReLU -> GAP -> Linear."""

    def __init__(self, key):
        k1, k2 = jax.random.split(key, 2)
        self.params = {
            "conv_w": 0.1 * jax.random.normal(k1, (COUT, CIN, KH, KW), jnp.float32),
            "bn_gamma": jnp.ones((COUT,), jnp.float32),
            "bn_beta": jnp.zeros((COUT,), jnp.float32),
            "fc_w": 0.1 * jax.random.normal(k2, (NCLASS, COUT), jnp.float32),
            "fc_b": jnp.zeros((NCLASS,), jnp.float32),
        }
        self.buffers = {
            "bn_running_mean": jnp.zeros((COUT,), jnp.float32),
            "bn_running_var": jnp.ones((COUT,), jnp.float32),
        }
        # TODO(synk): num_batches_tracked (integer BN buffer) is not EMA-tracked here.
        self._refresh_derived()

    # ---- EMA-visible variables (parameters + running stats) ----
    def ema_vars(self):
        d = dict(self.params)
        d.update(self.buffers)
        return d

    def load_ema_vars(self, d):
        for k in self.params:
            self.params[k] = d[k]
        for k in self.buffers:
            self.buffers[k] = d[k]
        self._refresh_derived()   # re-fold weights/BN once per load, not per forward

    # ---- per-forward weight glue hoisted here (runs at init / after load) ----
    def _refresh_derived(self):
        w = self.params["conv_w"]                                  # (COUT,CIN,KH,KW)
        # im2col weight: row index = (kh*KW + kw)*CIN + c, column = output channel
        wim = jnp.transpose(w, (2, 3, 1, 0)).reshape(KIM, COUT)    # (KIM, COUT)
        self._wim = jnp.pad(wim, ((0, KPAD - KIM), (0, CPAD - COUT)))
        inv_std = jax.lax.rsqrt(self.buffers["bn_running_var"] + BN_EPS)
        scale = self.params["bn_gamma"] * inv_std
        shift = self.params["bn_beta"] - self.buffers["bn_running_mean"] * scale
        self._scale = jnp.pad(scale, (0, CPAD - COUT)).reshape(1, CPAD)
        self._shift = jnp.pad(shift, (0, CPAD - COUT)).reshape(1, CPAD)
        fcw = jnp.transpose(self.params["fc_w"]) * (1.0 / (H * W))  # pool-avg folded
        self._fcw = jnp.pad(fcw, ((0, CPAD - COUT), (0, NPAD - NCLASS)))
        self._fcb = jnp.pad(self.params["fc_b"], (0, NPAD - NCLASS)).reshape(1, NPAD)

    def __call__(self, x_nchw):
        return _forward_jit(x_nchw, self._wim, self._scale, self._shift,
                            self._fcw, self._fcb)


# ---------------------------- EMA / EMAWrapper ------------------------------

class EMA:
    def __init__(self, mu):
        self.mu = float(mu)
        self._mu_arr = jnp.asarray([self.mu], jnp.float32)   # SMEM scalar operand
        self._shapes = None
        self.shadow_packed = None    # stays permanently packed as a (rows,128) slab

    def register(self, params):
        for k, v in params.items():
            assert jnp.issubdtype(v.dtype, jnp.floating), (
                f"non-float EMA var {k!r} unsupported")
        self._shapes = {k: tuple(v.shape) for k, v in params.items()}
        self.shadow_packed = _pack(params)   # packed once, never re-packed

    def __call__(self, new_params):
        self.shadow_packed = _ema_update_jit(self._mu_arr, self.shadow_packed,
                                             dict(new_params))

    def shadow_tree(self):
        return _unpack(self.shadow_packed, self._shapes)   # only on restore_ema


class EMAWrapper:
    def __init__(self, ema_decay, model):
        self.model = model
        self.ema = EMA(ema_decay)
        self.ema.register(self.model.ema_vars())
        self.curr = dict(self.model.ema_vars())

    def __call__(self, *args):          # forward == model forward
        return self.model(*args)

    def update_ema(self):
        self.ema(self.model.ema_vars())

    def restore_ema(self):
        self.curr = dict(self.model.ema_vars())
        self.model.load_ema_vars(self.ema.shadow_tree())

    def restore_latest(self):
        self.model.load_ema_vars(self.curr)


# --------------------------- pure-JAX reference -----------------------------

def reference_forward(model, x_nchw):
    x = jnp.transpose(x_nchw, (0, 2, 3, 1))
    xpad = jnp.pad(x, ((0, 0), (1, 1), (1, 1), (0, 0)))
    w = jnp.transpose(model.params["conv_w"], (2, 3, 1, 0))       # (KH,KW,CIN,COUT)
    out = jnp.zeros((B, H, W, COUT), jnp.float32)
    for kh in range(KH):
        for kw in range(KW):
            out = out + jnp.einsum("bhwc,co->bhwo",
                                   xpad[:, kh:kh + H, kw:kw + W, :], w[kh, kw])
    inv_std = jax.lax.rsqrt(model.buffers["bn_running_var"] + BN_EPS)
    scale = model.params["bn_gamma"] * inv_std
    shift = model.params["bn_beta"] - model.buffers["bn_running_mean"] * scale
    out = jnp.maximum(out * scale + shift, 0.0)
    pooled = jnp.mean(out, axis=(1, 2))
    return pooled @ jnp.transpose(model.params["fc_w"]) + model.params["fc_b"]


# ----------------------------------- main -----------------------------------

if __name__ == "__main__":
    key = jax.random.PRNGKey(0)
    k_model, k_x = jax.random.split(key, 2)

    model = SmallConvNet(k_model)
    wrapper = EMAWrapper(EMA_DECAY, model)

    x = jax.random.normal(k_x, (B, CIN, H, W), jnp.float32)   # NCHW, PyTorch-style

    # forward pass (EMAWrapper.forward == model.forward)
    logits = wrapper(x)
    assert logits.shape == (B, NCLASS)
    assert jnp.allclose(logits, reference_forward(model, x), atol=1e-3, rtol=1e-3)

    # simulate a training step: perturb live params, run the EMA update cycle.
    orig = dict(model.ema_vars())
    perturbed = {k: v + 0.01 * jnp.ones_like(v) for k, v in orig.items()}
    model.load_ema_vars(perturbed)
    wrapper.update_ema()

    shadow = wrapper.ema.shadow_tree()
    for k in orig:
        want = EMA_DECAY * orig[k] + (1.0 - EMA_DECAY) * perturbed[k]
        assert jnp.allclose(shadow[k], want, atol=1e-5, rtol=1e-5), f"ema {k}"

    wrapper.restore_ema()            # swap EMA weights in
    logits_ema = wrapper(x)
    assert jnp.allclose(logits_ema, reference_forward(model, x), atol=1e-3, rtol=1e-3)

    wrapper.restore_latest()         # swap latest weights back
    logits_latest = wrapper(x)
    assert jnp.allclose(logits_latest, reference_forward(model, x),
                        atol=1e-3, rtol=1e-3)

    jax.block_until_ready((logits, logits_ema, logits_latest))
    assert logits_ema.shape == (B, NCLASS) and logits_latest.shape == (B, NCLASS)
    print("KERNEL_OK")
</pallas_src>

<mosaic_0001>
module attributes {stable_mosaic.version = 11 : i64} {
  func.func @_forward_kernel(%arg0: memref<512x128xf32, #tpu.memory_space<vmem>>, %arg1: memref<128x128xf32, #tpu.memory_space<vmem>>, %arg2: memref<1x128xf32, #tpu.memory_space<vmem>>, %arg3: memref<1x128xf32, #tpu.memory_space<vmem>>, %arg4: memref<128x128xf32, #tpu.memory_space<vmem>>, %arg5: memref<1x128xf32, #tpu.memory_space<vmem>>, %arg6: memref<2x128xf32, #tpu.memory_space<vmem>>) attributes {dimension_semantics = [], scalar_prefetch = 0 : i64, scratch_operands = 0 : i64, tpu.core_type = #tpu.core_type<tc>} {
    %c0 = arith.constant 0 : index
    %c0_0 = arith.constant 0 : index
    %0 = vector.load %arg0[%c0, %c0_0] : memref<512x128xf32, #tpu.memory_space<vmem>>, vector<512x128xf32>
    %c0_1 = arith.constant 0 : index
    %c0_2 = arith.constant 0 : index
    %1 = vector.load %arg1[%c0_1, %c0_2] : memref<128x128xf32, #tpu.memory_space<vmem>>, vector<128x128xf32>
    %cst = arith.constant dense<0.000000e+00> : vector<512x128xf32>
    %2 = tpu.matmul %0, %1, %cst {dimension_numbers = #tpu.dot_dimension_numbers<[1], [0], [0], [1], [0, 0, 1, 1], [], []>} : vector<512x128xf32>, vector<128x128xf32>, vector<512x128xf32> -> vector<512x128xf32>
    %c0_3 = arith.constant 0 : index
    %c0_4 = arith.constant 0 : index
    %3 = vector.load %arg2[%c0_3, %c0_4] : memref<1x128xf32, #tpu.memory_space<vmem>>, vector<1x128xf32>
    %4 = vector.broadcast %3 : vector<1x128xf32> to vector<512x128xf32>
    %5 = arith.mulf %2, %4 : vector<512x128xf32>
    %c0_5 = arith.constant 0 : index
    %c0_6 = arith.constant 0 : index
    %6 = vector.load %arg3[%c0_5, %c0_6] : memref<1x128xf32, #tpu.memory_space<vmem>>, vector<1x128xf32>
    %7 = vector.broadcast %6 : vector<1x128xf32> to vector<512x128xf32>
    %8 = arith.addf %5, %7 : vector<512x128xf32>
    %cst_7 = arith.constant 0.000000e+00 : f32
    %9 = vector.broadcast %cst_7 : f32 to vector<512x128xf32>
    %10 = arith.maximumf %8, %9 : vector<512x128xf32>
    %11 = vector.shape_cast %10 : vector<512x128xf32> to vector<2x256x128xf32>
    %cst_8 = arith.constant dense<0.000000e+00> : vector<2x128xf32>
    %12 = vector.multi_reduction <add>, %11, %cst_8 [1] : vector<2x256x128xf32> to vector<2x128xf32>
    %c0_9 = arith.constant 0 : index
    %c0_10 = arith.constant 0 : index
    %13 = vector.load %arg4[%c0_9, %c0_10] : memref<128x128xf32, #tpu.memory_space<vmem>>, vector<128x128xf32>
    %cst_11 = arith.constant dense<0.000000e+00> : vector<2x128xf32>
    %14 = tpu.matmul %12, %13, %cst_11 {dimension_numbers = #tpu.dot_dimension_numbers<[1], [0], [0], [1], [0, 0, 1, 1], [], []>} : vector<2x128xf32>, vector<128x128xf32>, vector<2x128xf32> -> vector<2x128xf32>
    %c0_12 = arith.constant 0 : index
    %c0_13 = arith.constant 0 : index
    %15 = vector.load %arg5[%c0_12, %c0_13] : memref<1x128xf32, #tpu.memory_space<vmem>>, vector<1x128xf32>
    %16 = vector.broadcast %15 : vector<1x128xf32> to vector<2x128xf32>
    %17 = arith.addf %14, %16 : vector<2x128xf32>
    %c0_14 = arith.constant 0 : index
    %c0_15 = arith.constant 0 : index
    %18 = vector.load %arg6[%c0_14, %c0_15] : memref<2x128xf32, #tpu.memory_space<vmem>>, vector<2x128xf32>
    tpu.vector_store %arg6[%c0_14, %c0_15], %17 {strides = array<i32>} : memref<2x128xf32, #tpu.memory_space<vmem>>, vector<2x128xf32>,
    return
  }
}

</mosaic_0001>

<bundles_post_ra>
// kernel: _forward_jit.1
= control target key start
LH: loop header
LB: loop body
LE: loop exit
PB: predicated region body
PF: predicated region fallthrough
CT: control target
= control target key end

     0   :  { %s1747_s0 = inlined_call_operand.vmem [shape: f32[512,128], index: 0, kind: input, shape index: {}]   ;;  %s1748_s1 = inlined_call_operand.vmem [shape: f32[128,128], index: 1, kind: input, shape index: {}]   ;;  %s1749_s2 = inlined_call_operand.vmem [shape: f32[1,128], index: 2, kind: input, shape index: {}]   ;;  %s1750_s3 = inlined_call_operand.vmem [shape: f32[1,128], index: 3, kind: input, shape index: {}]   ;;  %s1751_s4 = inlined_call_operand.vmem [shape: f32[128,128], index: 4, kind: input, shape index: {}]   ;;  %s1752_s5 = inlined_call_operand.vmem [shape: f32[1,128], index: 5, kind: input, shape index: {}]   ;;  %s1753_s6 = inlined_call_operand.hbm [shape: f32[2,128], index: 6, kind: output, shape index: {}]  }
   0x1   :  { %v103_v0 = vld [vmem:[%s1748_s1 + $0x78] sm:$0xff]  ;;  %v102_v1 = vld [vmem:[%s1748_s1 + $0x70] sm:$0xff]  ;;  %v101_v2 = vld [vmem:[%s1748_s1 + $0x68] sm:$0xff] }
   0x2   :  { %982 = vmatprep.subr.mxu0 %v103_v0  ;;  %1145 = vmatprep.subr.mxu1 %v103_v0  ;;  %v100_v3 = vld [vmem:[%s1748_s1 + $0x60] sm:$0xff]  ;;  %v99_v5 = vld [vmem:[%s1748_s1 + $0x58] sm:$0xff]  ;;  %v98_v6 = vld [vmem:[%s1748_s1 + $0x50] sm:$0xff] }
   0x3   :  { %983 = vmatpush3.msra.mxu0 %v103_v0  ;;  %1161 = vmatpush3.msra.mxu1 %v103_v0  ;;  %v24_v4 = vld [vmem:[%s1747_s0] sm:$0xff]  ;;  %v97_v7 = vld [vmem:[%s1748_s1 + $0x48] sm:$0xff]  ;;  %v95_v9 = vld [vmem:[%s1748_s1 + $0x38] sm:$0xff] }
   0x4   :  { %984 = vmatprep.subr.mxu0 %v102_v1  ;;  %1146 = vmatprep.subr.mxu1 %v102_v1  ;;  %v96_v8 = vld [vmem:[%s1748_s1 + $0x40] sm:$0xff]  ;;  %v94_v10 = vld [vmem:[%s1748_s1 + $0x30] sm:$0xff]  ;;  %v93_v11 = vld [vmem:[%s1748_s1 + $0x28] sm:$0xff] }
   0x5   :  { %985 = vmatpush3.msra.mxu0 %v102_v1  ;;  %1162 = vmatpush3.msra.mxu1 %v102_v1  ;;  %v92_v12 = vld [vmem:[%s1748_s1 + $0x20] sm:$0xff]  ;;  %v91_v13 = vld [vmem:[%s1748_s1 + $0x18] sm:$0xff]  ;;  %v90_v14 = vld [vmem:[%s1748_s1 + $0x10] sm:$0xff] }
   0x6   :  { %986 = vmatprep.subr.mxu0 %v101_v2  ;;  %1147 = vmatprep.subr.mxu1 %v101_v2  ;;  %v89_v15 = vld [vmem:[%s1748_s1 + $0x8] sm:$0xff] }
   0x7   :  { %987 = vmatpush3.msra.mxu0 %v101_v2  ;;  %1014 = vmatprep.mubr.f32.mxu0 %v24_v4 }
   0x8   :  { %988 = vmatprep.subr.mxu0 %v100_v3  ;;  %1163 = vmatpush3.msra.mxu1 %v101_v2 }
   0x9   :  { %989 = vmatpush3.msra.mxu0 %v100_v3  ;;  %1148 = vmatprep.subr.mxu1 %v100_v3 }
   0xa   :  { %990 = vmatprep.subr.mxu0 %v99_v5  ;;  %1164 = vmatpush3.msra.mxu1 %v100_v3 }
   0xb   :  { %991 = vmatpush3.msra.mxu0 %v99_v5  ;;  %1149 = vmatprep.subr.mxu1 %v99_v5 }
   0xc   :  { %992 = vmatprep.subr.mxu0 %v98_v6  ;;  %1165 = vmatpush3.msra.mxu1 %v99_v5 }
   0xd   :  { %993 = vmatpush3.msra.mxu0 %v98_v6  ;;  %1150 = vmatprep.subr.mxu1 %v98_v6 }
   0xe   :  { %994 = vmatprep.subr.mxu0 %v97_v7  ;;  %1166 = vmatpush3.msra.mxu1 %v98_v6 }
   0xf   :  { %995 = vmatpush3.msra.mxu0 %v97_v7  ;;  %1151 = vmatprep.subr.mxu1 %v97_v7 }
  0x10   :  { %996 = vmatprep.subr.mxu0 %v96_v8  ;;  %1167 = vmatpush3.msra.mxu1 %v97_v7 }
  0x11   :  { %997 = vmatpush3.msra.mxu0 %v96_v8  ;;  %1152 = vmatprep.subr.mxu1 %v96_v8 }
  0x12   :  { %998 = vmatprep.subr.mxu0 %v95_v9  ;;  %1168 = vmatpush3.msra.mxu1 %v96_v8 }
  0x13   :  { %999 = vmatpush3.msra.mxu0 %v95_v9  ;;  %1153 = vmatprep.subr.mxu1 %v95_v9 }
  0x14   :  { %1000 = vmatprep.subr.mxu0 %v94_v10  ;;  %1169 = vmatpush3.msra.mxu1 %v95_v9 }
  0x15   :  { %1001 = vmatpush3.msra.mxu0 %v94_v10  ;;  %1154 = vmatprep.subr.mxu1 %v94_v10 }
  0x16   :  { %1002 = vmatprep.subr.mxu0 %v93_v11  ;;  %1170 = vmatpush3.msra.mxu1 %v94_v10 }
  0x17   :  { %1003 = vmatpush3.msra.mxu0 %v93_v11  ;;  %1155 = vmatprep.subr.mxu1 %v93_v11 }
  0x18   :  { %1004 = vmatprep.subr.mxu0 %v92_v12  ;;  %1171 = vmatpush3.msra.mxu1 %v93_v11 }
  0x19   :  { %1005 = vmatpush3.msra.mxu0 %v92_v12  ;;  %1156 = vmatprep.subr.mxu1 %v92_v12 }
  0x1a   :  { %1006 = vmatprep.subr.mxu0 %v91_v13  ;;  %1172 = vmatpush3.msra.mxu1 %v92_v12 }
  0x1b   :  { %1007 = vmatpush3.msra.mxu0 %v91_v13  ;;  %1157 = vmatprep.subr.mxu1 %v91_v13 }
  0x1c   :  { %11 = vsyncpa [#allocation3], 0  ;;  %1008 = vmatprep.subr.mxu0 %v90_v14  ;;  %1173 = vmatpush3.msra.mxu1 %v91_v13  ;;  %v88_v16 = vld [vmem:[%s1748_s1] sm:$0xff]  ;;  %v25_v17 = vld [vmem:[%s1747_s0 + $0x8] sm:$0xff]  ;;  %vm1203_vm0 = vmmov 0   ;;  %vm794_vm1 = vcmask 1041409  }
  0x1d   :  { %1009 = vmatpush3.msra.mxu0 %v90_v14  ;;  %1158 = vmatprep.subr.mxu1 %v90_v14  ;;  %v26_v18 = vld [vmem:[%s1747_s0 + $0x10] sm:$0xff]  ;;  %v59_v20 = vld [vmem:[%s1747_s0 + $0x118] sm:$0xff]  ;;  %v60_v21 = vld [vmem:[%s1747_s0 + $0x120] sm:$0xff]  ;;  %s1204_s15 = smov [#allocation2]  }
  0x1e   :  { %1010 = vmatprep.subr.mxu0 %v89_v15  ;;  %1174 = vmatpush3.msra.mxu1 %v90_v14  ;;  %v58_v19 = vld [vmem:[%s1747_s0 + $0x110] sm:$0xff]  ;;  %v27_v22 = vld [vmem:[%s1747_s0 + $0x18] sm:$0xff]  ;;  %v28_v23 = vld [vmem:[%s1747_s0 + $0x20] sm:$0xff]  ;;  %s874_s16 = sshll.u32 %s1204_s15, 4  ;;  %s875_s16 = int_to_ptr.vmem [resolvable:$true] %s874_s16 }
  0x1f   :  { %1011 = vmatpush3.msra.mxu0 %v89_v15  ;;  %1159 = vmatprep.subr.mxu1 %v89_v15  ;;  %v61_v24 = vld [vmem:[%s1747_s0 + $0x128] sm:$0xff]  ;;  %v62_v25 = vld [vmem:[%s1747_s0 + $0x130] sm:$0xff]  ;;  %v63_v28 = vld [vmem:[%s1747_s0 + $0x138] sm:$0xff]  ;;  %s1180_s17 = scalar_lea.vmem %s875_s16, 32  ;;  %p1185_p1 = scmp.lt.s32.totalorder %s875_s16, %s875_s16 }
  0x20   :  { %1012 = vmatprep.subr.mxu0 %v88_v16  ;;  %1175 = vmatpush3.msra.mxu1 %v89_v15  ;;  %v29_v26 = vld [vmem:[%s1747_s0 + $0x28] sm:$0xff]  ;;  %v30_v27 = vld [vmem:[%s1747_s0 + $0x30] sm:$0xff]  ;;  %v64_v29 = vld [vmem:[%s1747_s0 + $0x140] sm:$0xff]  ;;  %p1181_p0 = scmp.ne.s32.totalorder %s875_s16, %s1180_s17  ;;  %p1186_p2 = scmp.lt.s32.totalorder %s1180_s17, %s1180_s17 }
  0x21   :  { %1013 = vmatpush3.msra.mxu0 %v88_v16  ;;  %1160 = vmatprep.subr.mxu1 %v88_v16  ;;  %v31_v30 = vld [vmem:[%s1747_s0 + $0x38] sm:$0xff]  ;;  %v32_v31 = vld [vmem:[%s1747_s0 + $0x40] sm:$0xff]  ;;  %v65_v32 = vld [vmem:[%s1747_s0 + $0x148] sm:$0xff] }
  0x22   :  { %1015 = vmatmul.mubr.f32.vlgmr.msra.gmra.mxu0 %v25_v17  ;;  %1176 = vmatpush3.msra.mxu1 %v88_v16  ;;  %v66_v33 = vld [vmem:[%s1747_s0 + $0x150] sm:$0xff]  ;;  %v33_v34 = vld [vmem:[%s1747_s0 + $0x48] sm:$0xff]  ;;  %v67_v36 = vld [vmem:[%s1747_s0 + $0x158] sm:$0xff]  ;;  %v1202_v17 = vmov 0.0   ;;  %p1187_p3 = por %p1186_p2, %p1185_p1 }
  0x23   :  { %1017 = vmatprep.mubr.f32.mxu0 %v26_v18  ;;  %1065 = vmatprep.mubr.f32.mxu1 %v58_v19  ;;  %v34_v35 = vld [vmem:[%s1747_s0 + $0x50] sm:$0xff]  ;;  %v68_v37 = vld [vmem:[%s1747_s0 + $0x160] sm:$0xff]  ;;  %v35_v38 = vld [vmem:[%s1747_s0 + $0x58] sm:$0xff] }
  0x24   :  { %1066 = vmatmul.mubr.f32.vlgmr.msra.gmra.mxu1 %v59_v20  ;;  %v36_v39 = vld [vmem:[%s1747_s0 + $0x60] sm:$0xff]  ;;  %v69_v40 = vld [vmem:[%s1747_s0 + $0x168] sm:$0xff]  ;;  %v70_v41 = vld [vmem:[%s1747_s0 + $0x170] sm:$0xff]  ;;  %1110 = vmatprep.subr.mxu1 %v1202_v17  ;;  %p1188_p4 = pnand %p1187_p3, %p1181_p0 }
  0x25   :  { %1068 = vmatprep.mubr.f32.mxu1 %v60_v21  ;;  %v37_v42 = vld [vmem:[%s1747_s0 + $0x68] sm:$0xff]  ;;  %v38_v43 = vld [vmem:[%s1747_s0 + $0x70] sm:$0xff]  ;;  %v71_v44 = vld [vmem:[%s1747_s0 + $0x178] sm:$0xff] }
  0x26   :  { %1018 = vmatmul.mubr.f32.gmra.mxu0 %v27_v22  ;;  %v72_v45 = vld [vmem:[%s1747_s0 + $0x180] sm:$0xff]  ;;  %v39_v46 = vld [vmem:[%s1747_s0 + $0x78] sm:$0xff]  ;;  %v73_v48 = vld [vmem:[%s1747_s0 + $0x188] sm:$0xff] }
  0x27   :  { %1020 = vmatprep.mubr.f32.mxu0 %v28_v23  ;;  %v40_v47 = vld [vmem:[%s1747_s0 + $0x80] sm:$0xff]  ;;  %v74_v49 = vld [vmem:[%s1747_s0 + $0x190] sm:$0xff]  ;;  %v41_v50 = vld [vmem:[%s1747_s0 + $0x88] sm:$0xff] }
  0x28   :  { %1069 = vmatmul.mubr.f32.gmra.mxu1 %v61_v24  ;;  %v42_v51 = vld [vmem:[%s1747_s0 + $0x90] sm:$0xff]  ;;  %v75_v52 = vld [vmem:[%s1747_s0 + $0x198] sm:$0xff]  ;;  %v76_v53 = vld [vmem:[%s1747_s0 + $0x1a0] sm:$0xff] }
  0x29   :  { %1071 = vmatprep.mubr.f32.mxu1 %v62_v25  ;;  %v43_v54 = vld [vmem:[%s1747_s0 + $0x98] sm:$0xff]  ;;  %v44_v55 = vld [vmem:[%s1747_s0 + $0xa0] sm:$0xff]  ;;  %v77_v56 = vld [vmem:[%s1747_s0 + $0x1a8] sm:$0xff] }
  0x2a   :  { %1021 = vmatmul.mubr.f32.gmra.mxu0 %v29_v26  ;;  %v78_v57 = vld [vmem:[%s1747_s0 + $0x1b0] sm:$0xff]  ;;  %v45_v58 = vld [vmem:[%s1747_s0 + $0xa8] sm:$0xff]  ;;  %v79_v60 = vld [vmem:[%s1747_s0 + $0x1b8] sm:$0xff] }
  0x2b   :  { %1023 = vmatprep.mubr.f32.mxu0 %v30_v27  ;;  %v46_v59 = vld [vmem:[%s1747_s0 + $0xb0] sm:$0xff]  ;;  %v80_v61 = vld [vmem:[%s1747_s0 + $0x1c0] sm:$0xff]  ;;  %v47_v62 = vld [vmem:[%s1747_s0 + $0xb8] sm:$0xff] }
  0x2c   :  { %1072 = vmatmul.mubr.f32.gmra.mxu1 %v63_v28  ;;  %v48_v63 = vld [vmem:[%s1747_s0 + $0xc0] sm:$0xff]  ;;  %v81_v0 = vld [vmem:[%s1747_s0 + $0x1c8] sm:$0xff]  ;;  %v82_v1 = vld [vmem:[%s1747_s0 + $0x1d0] sm:$0xff] }
  0x2d   :  { %1074 = vmatprep.mubr.f32.mxu1 %v64_v29  ;;  %v49_v2 = vld [vmem:[%s1747_s0 + $0xc8] sm:$0xff]  ;;  %v50_v3 = vld [vmem:[%s1747_s0 + $0xd0] sm:$0xff]  ;;  %v83_v4 = vld [vmem:[%s1747_s0 + $0x1d8] sm:$0xff] }
  0x2e   :  { %1024 = vmatmul.mubr.f32.gmra.mxu0 %v31_v30  ;;  %v84_v5 = vld [vmem:[%s1747_s0 + $0x1e0] sm:$0xff]  ;;  %v51_v6 = vld [vmem:[%s1747_s0 + $0xd8] sm:$0xff]  ;;  %v85_v8 = vld [vmem:[%s1747_s0 + $0x1e8] sm:$0xff] }
  0x2f   :  { %1026 = vmatprep.mubr.f32.mxu0 %v32_v31  ;;  %v52_v7 = vld [vmem:[%s1747_s0 + $0xe0] sm:$0xff]  ;;  %v86_v9 = vld [vmem:[%s1747_s0 + $0x1f0] sm:$0xff]  ;;  %v53_v10 = vld [vmem:[%s1747_s0 + $0xe8] sm:$0xff] }
  0x30   :  { %1075 = vmatmul.mubr.f32.gmra.mxu1 %v65_v32  ;;  %v54_v11 = vld [vmem:[%s1747_s0 + $0xf0] sm:$0xff]  ;;  %v87_v12 = vld [vmem:[%s1747_s0 + $0x1f8] sm:$0xff]  ;;  %v56_v14 = vld [vmem:[%s1747_s0 + $0x100] sm:$0xff] }
  0x31   :  { %1077 = vmatprep.mubr.f32.mxu1 %v66_v33  ;;  %v55_v13 = vld [vmem:[%s1747_s0 + $0xf8] sm:$0xff]  ;;  %v57_v15 = vld [vmem:[%s1747_s0 + $0x108] sm:$0xff]  ;;  %v783_v18 = vld [vmem:[%s1751_s4 + $0x70] sm:$0xff] }
  0x32   :  { %1027 = vmatmul.mubr.f32.gmra.mxu0 %v33_v34  ;;  %v784_v16 = vld [vmem:[%s1751_s4 + $0x78] sm:$0xff]  ;;  %v782_v19 = vld [vmem:[%s1751_s4 + $0x68] sm:$0xff]  ;;  %v781_v20 = vld [vmem:[%s1751_s4 + $0x60] sm:$0xff] }
  0x33   :  { %1029 = vmatprep.mubr.f32.mxu0 %v34_v35  ;;  %1111 = vmatpush3.msra.mxu1 %v784_v16  ;;  %v780_v21 = vld [vmem:[%s1751_s4 + $0x58] sm:$0xff]  ;;  %v779_v22 = vld [vmem:[%s1751_s4 + $0x50] sm:$0xff]  ;;  %v778_v23 = vld [vmem:[%s1751_s4 + $0x48] sm:$0xff] }
  0x34   :  { %1078 = vmatmul.mubr.f32.gmra.mxu1 %v67_v36  ;;  %1112 = vmatprep.subr.mxu1 %v1202_v17  ;;  %v777_v24 = vld [vmem:[%s1751_s4 + $0x40] sm:$0xff]  ;;  %v776_v26 = vld [vmem:[%s1751_s4 + $0x38] sm:$0xff] }
  0x35   :  { %1080 = vmatprep.mubr.f32.mxu1 %v68_v37  ;;  %1113 = vmatpush3.msra.mxu1 %v783_v18  ;;  %v1516_v25 = vld [vmem:[%s1749_s2] ss:$0 sm:$0xff] }
  0x36   :  { %1030 = vmatmul.mubr.f32.gmra.mxu0 %v35_v38  ;;  %1114 = vmatprep.subr.mxu1 %v1202_v17  ;;  %v1524_v28 = vld [vmem:[%s1750_s3] ss:$0 sm:$0xff] }
  0x37   :  { %1032 = vmatprep.mubr.f32.mxu0 %v36_v39  ;;  %1115 = vmatpush3.msra.mxu1 %v782_v19  ;;  %v775_v39 = vld [vmem:[%s1751_s4 + $0x30] sm:$0xff] }
  0x38   :  { %1081 = vmatmul.mubr.f32.gmra.mxu1 %v69_v40  ;;  %1116 = vmatprep.subr.mxu1 %v1202_v17 }
  0x39   :  { %1083 = vmatprep.mubr.f32.mxu1 %v70_v41  ;;  %1117 = vmatpush3.msra.mxu1 %v781_v20 }
  0x3a   :  { %1033 = vmatmul.mubr.f32.gmra.mxu0 %v37_v42  ;;  %1118 = vmatprep.subr.mxu1 %v1202_v17 }
  0x3b   :  { %1035 = vmatprep.mubr.f32.mxu0 %v38_v43  ;;  %1119 = vmatpush3.msra.mxu1 %v780_v21 }
  0x3c   :  { %1084 = vmatmul.mubr.f32.gmra.mxu1 %v71_v44  ;;  %1120 = vmatprep.subr.mxu1 %v1202_v17  ;;  %v774_v44 = vld [vmem:[%s1751_s4 + $0x28] sm:$0xff] }
  0x3d   :  { %1086 = vmatprep.mubr.f32.mxu1 %v72_v45  ;;  %1121 = vmatpush3.msra.mxu1 %v779_v22 }
  0x3e   :  { %1036 = vmatmul.mubr.f32.gmra.mxu0 %v39_v46  ;;  %1122 = vmatprep.subr.mxu1 %v1202_v17 }
  0x3f   :  { %1038 = vmatprep.mubr.f32.mxu0 %v40_v47  ;;  %1123 = vmatpush3.msra.mxu1 %v778_v23 }
  0x40   :  { %1087 = vmatmul.mubr.f32.gmra.mxu1 %v73_v48  ;;  %1124 = vmatprep.subr.mxu1 %v1202_v17 }
  0x41   :  { %1089 = vmatprep.mubr.f32.mxu1 %v74_v49  ;;  %1125 = vmatpush3.msra.mxu1 %v777_v24 }
  0x42   :  { %1039 = vmatmul.mubr.f32.gmra.mxu0 %v41_v50  ;;  %1126 = vmatprep.subr.mxu1 %v1202_v17 }
  0x43   :  { %1041 = vmatprep.mubr.f32.mxu0 %v42_v51  ;;  %1127 = vmatpush3.msra.mxu1 %v776_v26  ;;  %v773_v51 = vld [vmem:[%s1751_s4 + $0x20] sm:$0xff] }
  0x44   :  { %1090 = vmatmul.mubr.f32.gmra.mxu1 %v75_v52  ;;  %1128 = vmatprep.subr.mxu1 %v1202_v17 }
  0x45   :  { %1092 = vmatprep.mubr.f32.mxu1 %v76_v53  ;;  %1129 = vmatpush3.msra.mxu1 %v775_v39 }
  0x46   :  { %1042 = vmatmul.mubr.f32.gmra.mxu0 %v43_v54  ;;  %1130 = vmatprep.subr.mxu1 %v1202_v17 }
  0x47   :  { %1044 = vmatprep.mubr.f32.mxu0 %v44_v55  ;;  %1131 = vmatpush3.msra.mxu1 %v774_v44 }
  0x48   :  { %1093 = vmatmul.mubr.f32.gmra.mxu1 %v77_v56  ;;  %1132 = vmatprep.subr.mxu1 %v1202_v17  ;;  %v772_v56 = vld [vmem:[%s1751_s4 + $0x18] sm:$0xff] }
  0x49   :  { %1095 = vmatprep.mubr.f32.mxu1 %v78_v57  ;;  %1133 = vmatpush3.msra.mxu1 %v773_v51 }
  0x4a   :  { %1045 = vmatmul.mubr.f32.gmra.mxu0 %v45_v58  ;;  %1134 = vmatprep.subr.mxu1 %v1202_v17 }
  0x4b   :  { %1047 = vmatprep.mubr.f32.mxu0 %v46_v59  ;;  %1135 = vmatpush3.msra.mxu1 %v772_v56 }
  0x4c   :  { %1096 = vmatmul.mubr.f32.gmra.mxu1 %v79_v60  ;;  %1136 = vmatprep.subr.mxu1 %v1202_v17 }
  0x4d   :  { %1098 = vmatprep.mubr.f32.mxu1 %v80_v61  ;;  %v771_v61 = vld [vmem:[%s1751_s4 + $0x10] sm:$0xff] }
  0x4e   :  { %1048 = vmatmul.mubr.f32.gmra.mxu0 %v47_v62  ;;  %1137 = vmatpush3.msra.mxu1 %v771_v61 }
  0x4f   :  { %1050 = vmatprep.mubr.f32.mxu0 %v48_v63  ;;  %1138 = vmatprep.subr.mxu1 %v1202_v17 }
  0x50   :  { %1099 = vmatmul.mubr.f32.gmra.mxu1 %v81_v0  ;;  %v770_v0 = vld [vmem:[%s1751_s4 + $0x8] sm:$0xff] }
  0x51   :  { %1101 = vmatprep.mubr.f32.mxu1 %v82_v1  ;;  %1139 = vmatpush3.msra.mxu1 %v770_v0 }
  0x52   :  { %1051 = vmatmul.mubr.f32.gmra.mxu0 %v49_v2  ;;  %1140 = vmatprep.subr.mxu1 %v1202_v17 }
  0x53   :  { %1053 = vmatprep.mubr.f32.mxu0 %v50_v3 }
  0x54   :  { %1102 = vmatmul.mubr.f32.gmra.mxu1 %v83_v4 }
  0x55   :  { %1104 = vmatprep.mubr.f32.mxu1 %v84_v5 }
  0x56   :  { %1054 = vmatmul.mubr.f32.gmra.mxu0 %v51_v6  ;;  %v769_v6 = vld [vmem:[%s1751_s4] sm:$0xff] }
  0x57   :  { %1056 = vmatprep.mubr.f32.mxu0 %v52_v7  ;;  %1141 = vmatpush3.msra.mxu1 %v769_v6 }
  0x58   :  { %1105 = vmatmul.mubr.f32.gmra.mxu1 %v85_v8 }
  0x59   :  { %1107 = vmatprep.mubr.f32.mxu1 %v86_v9 }
  0x5a   :  { %1057 = vmatmul.mubr.f32.gmra.mxu0 %v53_v10 }
  0x5b   :  { %1059 = vmatprep.mubr.f32.mxu0 %v54_v11 }
  0x5c   :  { %1108 = vmatmul.mubr.f32.gmra.mxu1 %v87_v12 }
  0x5d   :  { %1142 = vmatprep.mubr.msk.f32.mxu1 %vm1203_vm0, %v1202_v17 }
  0x5e   :  { %1060 = vmatmul.mubr.f32.gmra.mxu0 %v55_v13 }
  0x5f   :  { %1062 = vmatprep.mubr.f32.mxu0 %v56_v14 }
  0x62   :  { %1063 = vmatmul.mubr.f32.gmra.mxu0 %v57_v15 }
  0xe2   :  { %v1016_v27 = vpop.f32.mrf.mxu0 }
  0xe3   :  { %v497_v29 = vmul.f32 %v1016_v27, %v1516_v25 }
  0xe4   :  { %v170_v30 = vpop.f32.mrf.mxu0  ;;  %v1528_v31 = vpop.f32.mrf.mxu1 }
  0xe5   :  { %v568_v32 = vadd.f32 %v1524_v28, %v497_v29  ;;  %v496_v33 = vmul.f32 %v1516_v25, %v170_v30 }
  0xe6   :  { %v1019_v34 = vpop.f32.mrf.mxu0  ;;  %v1534_v38 = vpop.f32.mrf.mxu1 }
  0xe7   :  { %v567_v35 = vadd.f32 %v1524_v28, %v496_v33  ;;  %v499_v36 = vmul.f32 %v1019_v34, %v1516_v25  ;;  %v632_v40 = vmax.f32 %v568_v32, 0.0 }
  0xe8   :  { %v180_v37 = vpop.f32.mrf.mxu0  ;;  %v1547_v50 = vpop.f32.mrf.mxu1 }
  0xe9   :  { %v631_v41 = vmax.f32 %v567_v35, 0.0  ;;  %v498_v42 = vmul.f32 %v1516_v25, %v180_v37  ;;  %v570_v46 = vadd.f32 %v1524_v28, %v499_v36 }
  0xea   :  { %v1022_v43 = vpop.f32.mrf.mxu0  ;;  %v1564_v63 = vpop.f32.mrf.mxu1 }
  0xeb   :  { %v695_v45 = vadd.f32 %v632_v40, %v631_v41  ;;  %v569_v47 = vadd.f32 %v1524_v28, %v498_v42  ;;  %v501_v48 = vmul.f32 %v1022_v43, %v1516_v25  ;;  %v634_v57 = vmax.f32 %v570_v46, 0.0 }
  0xec   :  { %v190_v49 = vpop.f32.mrf.mxu0  ;;  %v1579_v12 = vpop.f32.mrf.mxu1 }
  0xed   :  { %v633_v52 = vmax.f32 %v569_v47, 0.0  ;;  %v500_v53 = vmul.f32 %v1516_v25, %v190_v49  ;;  %v572_v54 = vadd.f32 %v1524_v28, %v501_v48 }
  0xee   :  { %v1025_v55 = vpop.f32.mrf.mxu0  ;;  %v1586_v24 = vpop.f32.mrf.mxu1 }
  0xef   :  { %v696_v58 = vadd.f32 %v695_v45, %v633_v52  ;;  %v571_v59 = vadd.f32 %v1524_v28, %v500_v53  ;;  %v503_v60 = vmul.f32 %v1025_v55, %v1516_v25  ;;  %v636_v4 = vmax.f32 %v572_v54, 0.0 }
  0xf0   :  { %v200_v62 = vpop.f32.mrf.mxu0  ;;  %v1592_v37 = vpop.f32.mrf.mxu1 }
  0xf1   :  { %v635_v1 = vmax.f32 %v571_v59, 0.0  ;;  %v697_v2 = vadd.f32 %v696_v58, %v634_v57  ;;  %v502_v3 = vmul.f32 %v1516_v25, %v200_v62  ;;  %v574_v8 = vadd.f32 %v1524_v28, %v503_v60 }
  0xf2   :  { %v1028_v5 = vpop.f32.mrf.mxu0  ;;  %v1598_v49 = vpop.f32.mrf.mxu1 }
  0xf3   :  { %v698_v7 = vadd.f32 %v697_v2, %v635_v1  ;;  %v573_v9 = vadd.f32 %v1524_v28, %v502_v3  ;;  %v505_v10 = vmul.f32 %v1028_v5, %v1516_v25  ;;  %v638_v19 = vmax.f32 %v574_v8, 0.0 }
  0xf4   :  { %v210_v11 = vpop.f32.mrf.mxu0  ;;  %v1604_v61 = vpop.f32.mrf.mxu1 }
  0xf5   :  { %v637_v13 = vmax.f32 %v573_v9, 0.0  ;;  %v699_v14 = vadd.f32 %v698_v7, %v636_v4  ;;  %v504_v15 = vmul.f32 %v1516_v25, %v210_v11  ;;  %v576_v16 = vadd.f32 %v1524_v28, %v505_v10 }
  0xf6   :  { %v1031_v18 = vpop.f32.mrf.mxu0  ;;  %v1610_v9 = vpop.f32.mrf.mxu1 }
  0xf7   :  { %v700_v20 = vadd.f32 %v699_v14, %v637_v13  ;;  %v575_v21 = vadd.f32 %v1524_v28, %v504_v15  ;;  %v507_v22 = vmul.f32 %v1031_v18, %v1516_v25  ;;  %v640_v29 = vmax.f32 %v576_v16, 0.0 }
  0xf8   :  { %v220_v23 = vpop.f32.mrf.mxu0 }
  0xf9   :  { %v639_v26 = vmax.f32 %v575_v21, 0.0  ;;  %v701_v27 = vadd.f32 %v700_v20, %v638_v19  ;;  %v506_v17 = vmul.f32 %v1516_v25, %v220_v23  ;;  %v578_v33 = vadd.f32 %v1524_v28, %v507_v22  ;;  %v1616_v22 = vpop.f32.mrf.mxu1 }
  0xfa   :  { %v1034_v30 = vpop.f32.mrf.mxu0 }
  0xfb   :  { %v702_v32 = vadd.f32 %v701_v27, %v639_v26  ;;  %v577_v34 = vadd.f32 %v1524_v28, %v506_v17  ;;  %v509_v35 = vmul.f32 %v1034_v30, %v1516_v25  ;;  %v642_v44 = vmax.f32 %v578_v33, 0.0 }
  0xfc   :  { %v230_v36 = vpop.f32.mrf.mxu0 }
  0xfd   :  { %v641_v39 = vmax.f32 %v577_v34, 0.0  ;;  %v703_v40 = vadd.f32 %v702_v32, %v640_v29  ;;  %v508_v41 = vmul.f32 %v1516_v25, %v230_v36  ;;  %v580_v42 = vadd.f32 %v1524_v28, %v509_v35  ;;  %v1622_v36 = vpop.f32.mrf.mxu1 }
  0xfe   :  { %v1037_v43 = vpop.f32.mrf.mxu0 }
  0xff   :  { %v704_v45 = vadd.f32 %v703_v40, %v641_v39  ;;  %v579_v46 = vadd.f32 %v1524_v28, %v508_v41  ;;  %v511_v47 = vmul.f32 %v1037_v43, %v1516_v25  ;;  %v644_v54 = vmax.f32 %v580_v42, 0.0 }
 0x100   :  { %v240_v48 = vpop.f32.mrf.mxu0 }
 0x101   :  { %v643_v51 = vmax.f32 %v579_v46, 0.0  ;;  %v705_v52 = vadd.f32 %v704_v45, %v642_v44  ;;  %v510_v53 = vmul.f32 %v1516_v25, %v240_v48  ;;  %v582_v57 = vadd.f32 %v1524_v28, %v511_v47 }
 0x102   :  { %v1040_v55 = vpop.f32.mrf.mxu0 }
 0x103   :  { %v706_v56 = vadd.f32 %v705_v52, %v643_v51  ;;  %v581_v58 = vadd.f32 %v1524_v28, %v510_v53  ;;  %v513_v59 = vmul.f32 %v1040_v55, %v1516_v25  ;;  %v646_v4 = vmax.f32 %v582_v57, 0.0  ;;  %v1628_v51 = vpop.f32.mrf.mxu1 }
 0x104   :  { %v250_v60 = vpop.f32.mrf.mxu0 }
 0x105   :  { %v645_v62 = vmax.f32 %v581_v58, 0.0  ;;  %v707_v0 = vadd.f32 %v706_v56, %v644_v54  ;;  %v512_v1 = vmul.f32 %v1516_v25, %v250_v60  ;;  %v584_v2 = vadd.f32 %v1524_v28, %v513_v59 }
 0x106   :  { %v1043_v3 = vpop.f32.mrf.mxu0 }
 0x107   :  { %v708_v5 = vadd.f32 %v707_v0, %v645_v62  ;;  %v583_v6 = vadd.f32 %v1524_v28, %v512_v1  ;;  %v515_v7 = vmul.f32 %v1043_v3, %v1516_v25  ;;  %v648_v14 = vmax.f32 %v584_v2, 0.0  ;;  %v1634_v0 = vpop.f32.mrf.mxu1 }
 0x108   :  { %v260_v8 = vpop.f32.mrf.mxu0 }
 0x109   :  { %v647_v10 = vmax.f32 %v583_v6, 0.0  ;;  %v709_v11 = vadd.f32 %v708_v5, %v646_v4  ;;  %v514_v13 = vmul.f32 %v1516_v25, %v260_v8  ;;  %v586_v18 = vadd.f32 %v1524_v28, %v515_v7 }
 0x10a   :  { %v1046_v15 = vpop.f32.mrf.mxu0 }
 0x10b   :  { %v710_v16 = vadd.f32 %v709_v11, %v647_v10  ;;  %v585_v19 = vadd.f32 %v1524_v28, %v514_v13  ;;  %v517_v20 = vmul.f32 %v1046_v15, %v1516_v25  ;;  %v650_v30 = vmax.f32 %v586_v18, 0.0  ;;  %v1640_v13 = vpop.f32.mrf.mxu1 }
 0x10c   :  { %v270_v21 = vpop.f32.mrf.mxu0 }
 0x10d   :  { %v649_v23 = vmax.f32 %v585_v19, 0.0  ;;  %v711_v26 = vadd.f32 %v710_v16, %v648_v14  ;;  %v516_v27 = vmul.f32 %v1516_v25, %v270_v21  ;;  %v588_v17 = vadd.f32 %v1524_v28, %v517_v20 }
 0x10e   :  { %v1049_v29 = vpop.f32.mrf.mxu0 }
 0x10f   :  { %v712_v32 = vadd.f32 %v711_v26, %v649_v23  ;;  %v587_v33 = vadd.f32 %v1524_v28, %v516_v27  ;;  %v519_v34 = vmul.f32 %v1049_v29, %v1516_v25  ;;  %v652_v42 = vmax.f32 %v588_v17, 0.0  ;;  %v1646_v17 = vpop.f32.mrf.mxu1 }
 0x110   :  { %v280_v35 = vpop.f32.mrf.mxu0 }
 0x111   :  { %v651_v39 = vmax.f32 %v587_v33, 0.0  ;;  %v713_v40 = vadd.f32 %v712_v32, %v650_v30  ;;  %v518_v41 = vmul.f32 %v1516_v25, %v280_v35  ;;  %v590_v45 = vadd.f32 %v1524_v28, %v519_v34 }
 0x112   :  { %v1052_v43 = vpop.f32.mrf.mxu0  ;;  %v530_v35 = vmul.f32 %v1516_v25, %v1534_v38 }
 0x113   :  { %v714_v44 = vadd.f32 %v713_v40, %v651_v39  ;;  %v589_v46 = vadd.f32 %v1524_v28, %v518_v41  ;;  %v521_v47 = vmul.f32 %v1052_v43, %v1516_v25  ;;  %v654_v57 = vmax.f32 %v590_v45, 0.0  ;;  %v1656_v45 = vpop.f32.mrf.mxu1 }
 0x114   :  { %v290_v48 = vpop.f32.mrf.mxu0  ;;  %v531_v43 = vmul.f32 %v1528_v31, %v1516_v25  ;;  %v601_v38 = vadd.f32 %v1524_v28, %v530_v35 }
 0x115   :  { %v653_v52 = vmax.f32 %v589_v46, 0.0  ;;  %v715_v53 = vadd.f32 %v714_v44, %v652_v42  ;;  %v520_v54 = vmul.f32 %v1516_v25, %v290_v48  ;;  %v592_v55 = vadd.f32 %v1524_v28, %v521_v47 }
 0x116   :  { %v1055_v56 = vpop.f32.mrf.mxu0  ;;  %v602_v31 = vadd.f32 %v1524_v28, %v531_v43 }
 0x117   :  { %v716_v58 = vadd.f32 %v715_v53, %v653_v52  ;;  %v591_v59 = vadd.f32 %v1524_v28, %v520_v54  ;;  %v523_v60 = vmul.f32 %v1055_v56, %v1516_v25  ;;  %v656_v4 = vmax.f32 %v592_v55, 0.0 }
 0x118   :  { %v300_v62 = vpop.f32.mrf.mxu0  ;;  %v532_v56 = vmul.f32 %v1516_v25, %v1564_v63  ;;  %v666_v63 = vmax.f32 %v602_v31, 0.0 }
 0x119   :  { %v655_v1 = vmax.f32 %v591_v59, 0.0  ;;  %v717_v2 = vadd.f32 %v716_v58, %v654_v57  ;;  %v522_v3 = vmul.f32 %v1516_v25, %v300_v62  ;;  %v594_v7 = vadd.f32 %v1524_v28, %v523_v60  ;;  %v420_v57 = vpop.f32.mrf.mxu1 }
 0x11a   :  { %v1058_v5 = vpop.f32.mrf.mxu0  ;;  %v533_v62 = vmul.f32 %v1547_v50, %v1516_v25 }
 0x11b   :  { %v718_v6 = vadd.f32 %v717_v2, %v655_v1  ;;  %v593_v8 = vadd.f32 %v1524_v28, %v522_v3  ;;  %v525_v10 = vmul.f32 %v1058_v5, %v1516_v25  ;;  %v658_v20 = vmax.f32 %v594_v7, 0.0  ;;  %v1672_v5 = vpop.f32.mrf.mxu1 }
 0x11c   :  { %v310_v11 = vpop.f32.mrf.mxu0  ;;  %v665_v2 = vmax.f32 %v601_v38, 0.0  ;;  %v603_v3 = vadd.f32 %v1524_v28, %v532_v56  ;;  %v604_v7 = vadd.f32 %v1524_v28, %v533_v62 }
 0x11d   :  { %v657_v14 = vmax.f32 %v593_v8, 0.0  ;;  %v719_v15 = vadd.f32 %v718_v6, %v656_v4  ;;  %v524_v16 = vmul.f32 %v1516_v25, %v310_v11  ;;  %v596_v18 = vadd.f32 %v1524_v28, %v525_v10 }
 0x11e   :  { %v1061_v19 = vpop.f32.mrf.mxu0  ;;  %v534_v4 = vmul.f32 %v1516_v25, %v1586_v24  ;;  %v535_v8 = vmul.f32 %v1579_v12, %v1516_v25  ;;  %v667_v10 = vmax.f32 %v603_v3, 0.0  ;;  %v538_v12 = vmul.f32 %v1516_v25, %v1610_v9 }
 0x11f   :  { %v720_v21 = vadd.f32 %v719_v15, %v657_v14  ;;  %v595_v23 = vadd.f32 %v1524_v28, %v524_v16  ;;  %v527_v26 = vmul.f32 %v1061_v19, %v1516_v25  ;;  %v660_v33 = vmax.f32 %v596_v18, 0.0  ;;  %v430_v15 = vpop.f32.mrf.mxu1 }
 0x120   :  { %v320_v27 = vpop.f32.mrf.mxu0  ;;  %v605_v50 = vadd.f32 %v1524_v28, %v534_v4  ;;  %v536_v14 = vmul.f32 %v1516_v25, %v1598_v49  ;;  %v668_v16 = vmax.f32 %v604_v7, 0.0  ;;  %v606_v24 = vadd.f32 %v1524_v28, %v535_v8 }
 0x121   :  { %v659_v29 = vmax.f32 %v595_v23, 0.0  ;;  %v721_v30 = vadd.f32 %v720_v21, %v658_v20  ;;  %v526_v32 = vmul.f32 %v1516_v25, %v320_v27  ;;  %v598_v40 = vadd.f32 %v1524_v28, %v527_v26  ;;  %v1097_v26 = vpop.f32.mrf.mxu1 }
 0x122   :  { %v1064_v34 = vpop.f32.mrf.mxu0  ;;  %v537_v19 = vmul.f32 %v1592_v37, %v1516_v25  ;;  %v669_v20 = vmax.f32 %v605_v50, 0.0  ;;  %v607_v23 = vadd.f32 %v1524_v28, %v536_v14  ;;  %v670_v27 = vmax.f32 %v606_v24, 0.0 }
 0x123   :  { %v722_v39 = vadd.f32 %v721_v30, %v659_v29  ;;  %v597_v41 = vadd.f32 %v1524_v28, %v526_v32  ;;  %v529_v42 = vmul.f32 %v1064_v34, %v1516_v25  ;;  %v662_v53 = vmax.f32 %v598_v40, 0.0  ;;  %v440_v35 = vpop.f32.mrf.mxu1 }
 0x124   :  { %v330_v44 = vpop.f32.mrf.mxu0  ;;  %v608_v49 = vadd.f32 %v1524_v28, %v537_v19  ;;  %v539_v30 = vmul.f32 %v1604_v61, %v1516_v25  ;;  %v671_v32 = vmax.f32 %v607_v23, 0.0  ;;  %v609_v34 = vadd.f32 %v1524_v28, %v538_v12 }
 0x125   :  { %v661_v46 = vmax.f32 %v597_v41, 0.0  ;;  %v723_v47 = vadd.f32 %v722_v39, %v660_v33  ;;  %v600_v48 = vadd.f32 %v1524_v28, %v529_v42  ;;  %v528_v52 = vmul.f32 %v1516_v25, %v330_v44 }
 0x126   :  { %v540_v37 = vmul.f32 %v1516_v25, %v1622_v36  ;;  %v672_v39 = vmax.f32 %v608_v49, 0.0  ;;  %v610_v9 = vadd.f32 %v1524_v28, %v539_v30  ;;  %v541_v41 = vmul.f32 %v1616_v22, %v1516_v25 }
 0x127   :  { %v724_v54 = vadd.f32 %v723_v47, %v661_v46  ;;  %v599_v55 = vadd.f32 %v1524_v28, %v528_v52  ;;  %v664_v59 = vmax.f32 %v600_v48, 0.0  ;;  %v673_v42 = vmax.f32 %v609_v34, 0.0  ;;  %v1100_v46 = vpop.f32.mrf.mxu1 }
 0x128   :  { %v611_v44 = vadd.f32 %v1524_v28, %v540_v37  ;;  %v542_v61 = vmul.f32 %v1516_v25, %v1634_v0  ;;  %v674_v47 = vmax.f32 %v610_v9, 0.0  ;;  %v612_v36 = vadd.f32 %v1524_v28, %v541_v41 }
 0x129   :  { %v1665_v58 = vadd.f32 %v724_v54, %v662_v53  ;;  %v663_v60 = vmax.f32 %v599_v55, 0.0  ;;  %v543_v52 = vmul.f32 %v1628_v51, %v1516_v25  ;;  %v544_v22 = vmul.f32 %v1516_v25, %v1646_v17  ;;  %v450_v55 = vpop.f32.mrf.mxu1 }
 0x12a   :  { %v675_v38 = vmax.f32 %v611_v44, 0.0  ;;  %v613_v54 = vadd.f32 %v1524_v28, %v542_v61  ;;  %v676_v56 = vmax.f32 %v612_v36, 0.0  ;;  %v546_v51 = vmul.f32 %v1516_v25, %v420_v57 }
 0x12b   :  { %v732_v1 = vadd.f32 %v664_v59, %v663_v60  ;;  %v614_v0 = vadd.f32 %v1524_v28, %v543_v52  ;;  %v545_v59 = vmul.f32 %v1640_v13, %v1516_v25  ;;  %v547_v17 = vmul.f32 %v1656_v45, %v1516_v25 }
 0x12c   :  { %v677_v60 = vmax.f32 %v613_v54, 0.0  ;;  %v617_v8 = vadd.f32 %v1524_v28, %v546_v51  ;;  %v548_v13 = vmul.f32 %v1516_v25, %v430_v15  ;;  %v549_v57 = vmul.f32 %v1672_v5, %v1516_v25 }
 0x12d   :  { %v733_v6 = vadd.f32 %v732_v1, %v665_v2  ;;  %v615_v1 = vadd.f32 %v1524_v28, %v544_v22  ;;  %v1103_v2 = vpop.f32.mrf.mxu1  ;;  %v678_v3 = vmax.f32 %v614_v0, 0.0  ;;  %v618_v14 = vadd.f32 %v1524_v28, %v547_v17 }
 0x12e   :  { %v619_v24 = vadd.f32 %v1524_v28, %v548_v13  ;;  %v550_v45 = vmul.f32 %v1516_v25, %v440_v35  ;;  %v620_v23 = vadd.f32 %v1524_v28, %v549_v57  ;;  %v551_v15 = vmul.f32 %v1097_v26, %v1516_v25 }
 0x12f   :  { %v734_v11 = vadd.f32 %v733_v6, %v666_v63  ;;  %v616_v63 = vadd.f32 %v1524_v28, %v545_v59  ;;  %v679_v6 = vmax.f32 %v615_v1, 0.0  ;;  %v552_v49 = vmul.f32 %v1516_v25, %v450_v55 }
 0x130   :  { %v683_v12 = vmax.f32 %v619_v24, 0.0  ;;  %v684_v30 = vmax.f32 %v620_v23, 0.0  ;;  %v553_v34 = vmul.f32 %v1100_v46, %v1516_v25 }
 0x131   :  { %v735_v18 = vadd.f32 %v734_v11, %v667_v10  ;;  %v460_v10 = vpop.f32.mrf.mxu1  ;;  %v680_v11 = vmax.f32 %v616_v63, 0.0 }
 0x133   :  { %v736_v21 = vadd.f32 %v735_v18, %v668_v16  ;;  %v681_v16 = vmax.f32 %v617_v8, 0.0  ;;  %v1106_v19 = vpop.f32.mrf.mxu1 }
 0x135   :  { %v737_v29 = vadd.f32 %v736_v21, %v669_v20  ;;  %v682_v20 = vmax.f32 %v618_v14, 0.0  ;;  %v470_v5 = vpop.f32.mrf.mxu1 }
 0x137   :  { %v738_v33 = vadd.f32 %v737_v29, %v670_v27  ;;  %v621_v29 = vadd.f32 %v1524_v28, %v550_v45  ;;  %v1109_v26 = vpop.f32.mrf.mxu1 }
 0x139   :  { %v739_v40 = vadd.f32 %v738_v33, %v671_v32  ;;  %v622_v33 = vadd.f32 %v1524_v28, %v551_v15  ;;  %v685_v37 = vmax.f32 %v621_v29, 0.0  ;;  %v480_v46 = vpop.f32.mrf.mxu1 }
 0x13b   :  { %v740_v43 = vadd.f32 %v739_v40, %v672_v39  ;;  %v623_v39 = vadd.f32 %v1524_v28, %v552_v49  ;;  %v554_v40 = vmul.f32 %v1516_v25, %v460_v10  ;;  %v686_v9 = vmax.f32 %v622_v33, 0.0 }
 0x13d   :  { %v741_v48 = vadd.f32 %v740_v43, %v673_v42  ;;  %v624_v42 = vadd.f32 %v1524_v28, %v553_v34  ;;  %v555_v43 = vmul.f32 %v1103_v2, %v1516_v25  ;;  %v687_v44 = vmax.f32 %v623_v39, 0.0 }
 0x13f   :  { %v742_v53 = vadd.f32 %v741_v48, %v674_v47  ;;  %v625_v47 = vadd.f32 %v1524_v28, %v554_v40  ;;  %v556_v48 = vmul.f32 %v1516_v25, %v470_v5  ;;  %v688_v36 = vmax.f32 %v624_v42, 0.0 }
 0x141   :  { %v743_v31 = vadd.f32 %v742_v53, %v675_v38  ;;  %v626_v38 = vadd.f32 %v1524_v28, %v555_v43  ;;  %v557_v53 = vmul.f32 %v1106_v19, %v1516_v25  ;;  %v689_v54 = vmax.f32 %v625_v47, 0.0 }
 0x142   :  { %v627_v55 = vadd.f32 %v1524_v28, %v556_v48 }
 0x143   :  { %v744_v62 = vadd.f32 %v743_v31, %v676_v56  ;;  %v558_v56 = vmul.f32 %v1516_v25, %v480_v46  ;;  %v690_v31 = vmax.f32 %v626_v38, 0.0  ;;  %v628_v59 = vadd.f32 %v1524_v28, %v557_v53 }
 0x144   :  { %v691_v1 = vmax.f32 %v627_v55, 0.0 }
 0x145   :  { %v745_v4 = vadd.f32 %v744_v62, %v677_v60  ;;  %v559_v60 = vmul.f32 %v1109_v26, %v1516_v25  ;;  %v726_v62 = vrot.slane %v1665_v58, 4  ;;  %v629_v2 = vadd.f32 %v1524_v28, %v558_v56 }
 0x147   :  { %v746_v7 = vadd.f32 %v745_v4, %v678_v3  ;;  %v692_v3 = vmax.f32 %v628_v59, 0.0  ;;  %v630_v63 = vadd.f32 %v1524_v28, %v559_v60  ;;  %v727_v17 = vadd.f32 %v726_v62, %v1665_v58  ;;  %v884_v28 = vld [vmem:[%s1752_s5] ss:$0 sm:$0xff] }
 0x149   :  { %v747_v50 = vadd.f32 %v746_v7, %v679_v6  ;;  %v693_v6 = vmax.f32 %v629_v2, 0.0  ;;  %v694_v8 = vmax.f32 %v630_v63, 0.0  ;;  %v728_v10 = vrot.slane %v727_v17, 2 }
 0x14b   :  { %v748_v18 = vadd.f32 %v747_v50, %v680_v11  ;;  %v729_v25 = vadd.f32 %v728_v10, %v727_v17 }
 0x14d   :  { %v749_v21 = vadd.f32 %v748_v18, %v681_v16  ;;  %v730_v18 = vrot.slane %v729_v25, 1 }
 0x14f   :  { %v750_v27 = vadd.f32 %v749_v21, %v682_v20  ;;  %v731_v45 = vadd.f32 %v730_v18, %v729_v25 }
 0x151   :  { %v751_v32 = vadd.f32 %v750_v27, %v683_v12 }
 0x153   :  { %v752_v35 = vadd.f32 %v751_v32, %v684_v30 }
 0x155   :  { %v753_v41 = vadd.f32 %v752_v35, %v685_v37 }
 0x157   :  { %v754_v61 = vadd.f32 %v753_v41, %v686_v9 }
 0x159   :  { %v755_v52 = vadd.f32 %v754_v61, %v687_v44 }
 0x15b   :  { %v756_v22 = vadd.f32 %v755_v52, %v688_v36 }
 0x15d   :  { %v757_v0 = vadd.f32 %v756_v22, %v689_v54 }
 0x15f   :  { %v758_v51 = vadd.f32 %v757_v0, %v690_v31 }
 0x161   :  { %v759_v4 = vadd.f32 %v758_v51, %v691_v1 }
 0x163   :  { %v760_v7 = vadd.f32 %v759_v4, %v692_v3 }
 0x165   :  { %v761_v13 = vadd.f32 %v760_v7, %v693_v6 }
 0x167   :  { %v762_v11 = vadd.f32 %v761_v13, %v694_v8 }
 0x169   :  { %v763_v50 = vrot.slane %v762_v11, 4 }
 0x16b   :  { %v764_v14 = vadd.f32 %v763_v50, %v762_v11 }
 0x16d   :  { %v765_v57 = vrot.slane %v764_v14, 2 }
 0x16f   :  { %v766_v16 = vadd.f32 %v765_v57, %v764_v14 }
 0x171   :  { %v767_v24 = vrot.slane %v766_v16, 1 }
 0x173   :  { %v768_v19 = vadd.f32 %v767_v24, %v766_v16 }
 0x175   :  { %v795_v20 = vsel %vm794_vm1, %v768_v19, %v731_v45 }
 0x176   :  { %1143 = vmatmul.mubr.f32.vlgmr.msra.gmra.mxu1 %v795_v20 }
 0x236   :  { %v863_v58 = vpop.f32.mrf.mxu1 }
 0x237   :  { %v864_v21 = vadd.f32 %v884_v28, %v863_v58 }
 0x238   :  { %v1144_v23 = vpop.f32.mrf.mxu1 }
 0x239   :  { %867 = vst [vmem:[#allocation2] sm:$0x3] %v864_v21 }
 0x23a   :  { %1191 = shalt.err (!%p1188_p4)
}
 0x23b   :  { %877 = dma.vmem_to_hbm [thread:$0]  %s875_s16, 32, %s1753_s6, [#allocation3]  }
 0x23c   :  { %1200 = dma.done.wait [#allocation3], 32  }
 0x23d   :  { %1201 = vsyncadd [#allocation3], 4294967264 }
 0x23e   :  { %881 = vsyncpa [#allocation3], 1 }

</bundles_post_ra>
